<compile_context>
chip_gen: v7x
topology: tpu7x:2x2x1
jax: 0.10.0
libtpu: 0.0.40
codegen_flags: <defaults>
</compile_context>

<pallas_src>
import functools
import math

import jax
import jax.numpy as jnp
from jax.experimental import pallas as pl
from jax.experimental.pallas import tpu as pltpu


def _round_up(n, m):
    return (n + m - 1) // m * m


def _gelu_erf(v):
    # PyTorch nn.GELU() default: exact erf formulation (computed in f32).
    return 0.5 * v * (1.0 + jax.lax.erf(v * (1.0 / math.sqrt(2.0))))


def _gelu_tanh(v):
    # tanh approximation: runs on the EUP slot and overlaps the MXU. Not bit-identical
    # to nn.GELU()'s default erf.
    c = math.sqrt(2.0 / math.pi)
    return 0.5 * v * (1.0 + jnp.tanh(c * (v + 0.044715 * v * v * v)))


def _mlp_kernel(x_ref, w1_ref, b1_ref, w2_ref, b2_ref, w3_ref, b3_ref,
                w4_ref, b4_ref, o_ref, *, approximate):
    act = _gelu_tanh if approximate else _gelu_erf
    cdt = w1_ref.dtype  # MXU input dtype (f32 or bf16); accumulation is always f32

    x = x_ref[...].astype(cdt)

    h = jnp.dot(x, w1_ref[...], preferred_element_type=jnp.float32) + b1_ref[...]
    h = act(h).astype(cdt)

    h = jnp.dot(h, w2_ref[...], preferred_element_type=jnp.float32) + b2_ref[...]
    h = act(h).astype(cdt)

    h = jnp.dot(h, w3_ref[...], preferred_element_type=jnp.float32) + b3_ref[...]
    h = act(h).astype(cdt)

    h = jnp.dot(h, w4_ref[...], preferred_element_type=jnp.float32) + b4_ref[...]

    o_ref[...] = h.astype(o_ref.dtype)


def prepare_params(params, *, compute_dtype=jnp.float32):
    """Pad / cast the weights & biases ONCE (call outside the per-step hot path).

    Only the hidden feature dims are lane-padded to multiples of 128; input and
    output dims stay unpadded so no wrapper-side pad/slice of activations is needed.
    Weights are stored pre-transposed as [in, out] (y = x @ w + b == x @ W.T + b).
    """
    (w1, b1), (w2, b2), (w3, b3), (w4, b4) = params
    in_dim, h_dim = w1.shape
    out_dim = w4.shape[1]
    h_p = _round_up(h_dim, 128)
    cdt = jnp.dtype(compute_dtype)

    def pad2(a, rows, cols, dtype):
        a = jnp.pad(a, ((0, rows - a.shape[0]), (0, cols - a.shape[1])))
        return a.astype(dtype)

    return (
        (pad2(w1, in_dim, h_p, cdt), pad2(b1, 1, h_p, jnp.float32)),
        (pad2(w2, h_p, h_p, cdt), pad2(b2, 1, h_p, jnp.float32)),
        (pad2(w3, h_p, h_p, cdt), pad2(b3, 1, h_p, jnp.float32)),
        (pad2(w4, h_p, out_dim, cdt), pad2(b4, 1, out_dim, jnp.float32)),
    )


def _choose_batch_tile(B, *, max_tile=512, min_steps=4):
    # >= min_steps grid steps so v7x's 2 TensorCores each keep >= 2 steps (double
    # buffering of x load / y store); large batches use big ~512-row tiles (measured
    # ~85% of HBM roofline vs ~63% at 256) while staying a multiple of 8 sublanes.
    steps = max(min_steps, pl.cdiv(B, max_tile))
    tb = _round_up(pl.cdiv(B, steps), 8)
    return max(8, min(tb, _round_up(B, 8)))


def mlp_forward(x, prepared_params, *, batch_tile=None, approximate_gelu=False):
    """Fused 4-layer MLP forward.

    x: [B, input_size]; prepared_params: output of prepare_params() (padded once).
    Returns [B, output_size] in x.dtype with exact erf GELU semantics by default.
    """
    (w1, b1), (w2, b2), (w3, b3), (w4, b4) = prepared_params
    B, in_dim = x.shape
    assert w1.shape[0] == in_dim, "x feature dim must match prepared w1"
    h_p = w1.shape[1]
    out_dim = w4.shape[1]
    out_dtype = x.dtype
    cdt = jnp.dtype(w1.dtype)

    tb = int(batch_tile) if batch_tile is not None else _choose_batch_tile(B)
    tb = max(8, _round_up(min(tb, _round_up(B, 8)), 8))
    grid = (pl.cdiv(B, tb),)  # partial final block -> masked row store, no batch pad

    # Weights / biases: constant block across the grid -> single-buffered & resident.
    def resident_spec(a):
        return pl.BlockSpec(a.shape, lambda i: (0,) * a.ndim,
                            pipeline_mode=pl.Buffered(1))

    grid_spec = pltpu.PrefetchScalarGridSpec(
        num_scalar_prefetch=0,
        grid=grid,
        in_specs=[
            pl.BlockSpec((tb, in_dim), lambda i: (i, 0)),
            resident_spec(w1), resident_spec(b1),
            resident_spec(w2), resident_spec(b2),
            resident_spec(w3), resident_spec(b3),
            resident_spec(w4), resident_spec(b4),
        ],
        out_specs=pl.BlockSpec((tb, out_dim), lambda i: (i, 0)),
    )

    # VMEM budget: 2x-buffered x/out tiles + 1x-buffered weights + f32 activation
    # temporaries, 2x headroom, clamped to ~85% of physical per-core VMEM.
    csz = cdt.itemsize
    xsz = jnp.dtype(x.dtype).itemsize
    osz = jnp.dtype(out_dtype).itemsize
    in_l = _round_up(in_dim, 128)
    out_l = _round_up(out_dim, 128)
    w_bytes = (in_dim * h_p + 2 * h_p * h_p + h_p * out_dim) * csz
    b_bytes = 8 * (3 * h_p + out_l) * 4
    io_bytes = 2 * tb * in_l * xsz + 2 * tb * out_l * osz
    act_bytes = 4 * tb * h_p * 4
    needed = w_bytes + b_bytes + io_bytes + act_bytes
    try:
        vmem_cap = int(pltpu.get_tpu_info().vmem_capacity_bytes)
    except Exception:  # conservative fallback (v7x per-core size)
        vmem_cap = 64 * 2 ** 20
    vmem_limit = int(min(max(2 * needed, 32 * 2 ** 20), (vmem_cap * 17) // 20))

    flops = int(2 * B * (in_dim * h_p + 2 * h_p * h_p + h_p * out_dim))
    transcendentals = int(3 * B * h_p)
    bytes_accessed = int(B * in_dim * xsz + B * out_dim * osz
                         + w_bytes + (3 * h_p + out_dim) * 4)

    kernel = functools.partial(_mlp_kernel, approximate=approximate_gelu)

    return pl.pallas_call(
        kernel,
        out_shape=jax.ShapeDtypeStruct((B, out_dim), out_dtype),
        grid_spec=grid_spec,
        compiler_params=pltpu.CompilerParams(
            dimension_semantics=("parallel",),
            vmem_limit_bytes=vmem_limit),
        cost_estimate=pl.CostEstimate(
            flops=flops,
            transcendentals=transcendentals,
            bytes_accessed=bytes_accessed),
    )(x, w1, b1, w2, b2, w3, b3, w4, b4)


def init_params(key, input_size, hidden_size, output_size):
    """nn.Linear-style init U(-1/sqrt(fan_in), 1/sqrt(fan_in)); weights stored [in, out]."""
    dims = [(input_size, hidden_size),
            (hidden_size, hidden_size),
            (hidden_size, hidden_size),
            (hidden_size, output_size)]
    params = []
    for (fan_in, fan_out) in dims:
        key, kw, kb = jax.random.split(key, 3)
        bound = 1.0 / math.sqrt(fan_in)
        w = jax.random.uniform(kw, (fan_in, fan_out), jnp.float32, -bound, bound)
        b = jax.random.uniform(kb, (1, fan_out), jnp.float32, -bound, bound)
        params.append((w, b))
    return params


def mlp_reference(x, params):
    (w1, b1), (w2, b2), (w3, b3), (w4, b4) = params
    h = jax.nn.gelu(x @ w1 + b1, approximate=False)
    h = jax.nn.gelu(h @ w2 + b2, approximate=False)
    h = jax.nn.gelu(h @ w3 + b3, approximate=False)
    return h @ w4 + b4


if __name__ == "__main__":
    input_size, hidden_size, output_size = 48, 96, 24
    batch = 400  # -> tb=104, grid of 4 steps (>= 2 per TensorCore on v7x), no batch pad

    key = jax.random.PRNGKey(0)
    key, kx = jax.random.split(key)
    x = jax.random.normal(kx, (batch, input_size), jnp.float32)

    params = init_params(key, input_size, hidden_size, output_size)
    ref = mlp_reference(x, params)

    # f32 path: exact erf GELU -> matches PyTorch nn.GELU() semantics.
    prepped_f32 = prepare_params(params)                # pad/cast weights ONCE
    out = jax.block_until_ready(mlp_forward(x, prepped_f32))
    assert out.shape == (batch, output_size)
    assert jnp.allclose(out, ref, atol=1e-4, rtol=1e-4), "f32 mismatch vs reference"

    # bf16-weights path: bf16 MXU inputs, f32 accumulation/GELU (looser tolerance).
    prepped_bf16 = prepare_params(params, compute_dtype=jnp.bfloat16)
    out_bf16 = jax.block_until_ready(mlp_forward(x, prepped_bf16))
    assert out_bf16.shape == (batch, output_size)
    assert jnp.allclose(out_bf16, ref, atol=1e-1, rtol=1e-1), "bf16 mismatch vs reference"

    print("KERNEL_OK")
</pallas_src>

<mosaic_0001>
module attributes {stable_mosaic.version = 11 : i64} {
  func.func @_mlp_kernel(%arg0: i32, %arg1: memref<104x48xf32, #tpu.memory_space<vmem>>, %arg2: memref<48x128xf32, #tpu.memory_space<vmem>>, %arg3: memref<1x128xf32, #tpu.memory_space<vmem>>, %arg4: memref<128x128xf32, #tpu.memory_space<vmem>>, %arg5: memref<1x128xf32, #tpu.memory_space<vmem>>, %arg6: memref<128x128xf32, #tpu.memory_space<vmem>>, %arg7: memref<1x128xf32, #tpu.memory_space<vmem>>, %arg8: memref<128x24xf32, #tpu.memory_space<vmem>>, %arg9: memref<1x24xf32, #tpu.memory_space<vmem>>, %arg10: memref<104x24xf32, #tpu.memory_space<vmem>>) attributes {dimension_semantics = [#tpu.dimension_semantics<parallel>], iteration_bounds = array<i64: 4>, scalar_prefetch = 0 : i64, scratch_operands = 0 : i64, tpu.core_type = #tpu.core_type<tc>, window_params = [{transform_indices = @transform_0, window_bounds = array<i64: 104, 48>}, {pipeline_mode = #tpu.pipeline_mode<synchronous>, transform_indices = @transform_1, window_bounds = array<i64: 48, 128>}, {pipeline_mode = #tpu.pipeline_mode<synchronous>, transform_indices = @transform_2, window_bounds = array<i64: 1, 128>}, {pipeline_mode = #tpu.pipeline_mode<synchronous>, transform_indices = @transform_3, window_bounds = array<i64: 128, 128>}, {pipeline_mode = #tpu.pipeline_mode<synchronous>, transform_indices = @transform_4, window_bounds = array<i64: 1, 128>}, {pipeline_mode = #tpu.pipeline_mode<synchronous>, transform_indices = @transform_5, window_bounds = array<i64: 128, 128>}, {pipeline_mode = #tpu.pipeline_mode<synchronous>, transform_indices = @transform_6, window_bounds = array<i64: 1, 128>}, {pipeline_mode = #tpu.pipeline_mode<synchronous>, transform_indices = @transform_7, window_bounds = array<i64: 128, 24>}, {pipeline_mode = #tpu.pipeline_mode<synchronous>, transform_indices = @transform_8, window_bounds = array<i64: 1, 24>}, {transform_indices = @transform_9, window_bounds = array<i64: 104, 24>}]} {
    %c0 = arith.constant 0 : index
    %c0_0 = arith.constant 0 : index
    %0 = vector.load %arg1[%c0, %c0_0] : memref<104x48xf32, #tpu.memory_space<vmem>>, vector<104x48xf32>
    %c0_1 = arith.constant 0 : index
    %c0_2 = arith.constant 0 : index
    %1 = vector.load %arg2[%c0_1, %c0_2] : memref<48x128xf32, #tpu.memory_space<vmem>>, vector<48x128xf32>
    %cst = arith.constant dense<0.000000e+00> : vector<104x128xf32>
    %2 = tpu.matmul %0, %1, %cst {dimension_numbers = #tpu.dot_dimension_numbers<[1], [0], [0], [1], [0, 0, 1, 1], [], []>} : vector<104x48xf32>, vector<48x128xf32>, vector<104x128xf32> -> vector<104x128xf32>
    %c0_3 = arith.constant 0 : index
    %c0_4 = arith.constant 0 : index
    %3 = vector.load %arg3[%c0_3, %c0_4] : memref<1x128xf32, #tpu.memory_space<vmem>>, vector<1x128xf32>
    %4 = vector.broadcast %3 : vector<1x128xf32> to vector<104x128xf32>
    %5 = arith.addf %2, %4 : vector<104x128xf32>
    %cst_5 = arith.constant 5.000000e-01 : f32
    %6 = vector.broadcast %cst_5 : f32 to vector<104x128xf32>
    %7 = arith.mulf %6, %5 : vector<104x128xf32>
    %cst_6 = arith.constant 0.707106769 : f32
    %8 = vector.broadcast %cst_6 : f32 to vector<104x128xf32>
    %9 = arith.mulf %5, %8 : vector<104x128xf32>
    %10 = math.erf %9 : vector<104x128xf32>
    %cst_7 = arith.constant 1.000000e+00 : f32
    %11 = vector.broadcast %cst_7 : f32 to vector<104x128xf32>
    %12 = arith.addf %11, %10 : vector<104x128xf32>
    %13 = arith.mulf %7, %12 : vector<104x128xf32>
    %c0_8 = arith.constant 0 : index
    %c0_9 = arith.constant 0 : index
    %14 = vector.load %arg4[%c0_8, %c0_9] : memref<128x128xf32, #tpu.memory_space<vmem>>, vector<128x128xf32>
    %cst_10 = arith.constant dense<0.000000e+00> : vector<104x128xf32>
    %15 = tpu.matmul %13, %14, %cst_10 {dimension_numbers = #tpu.dot_dimension_numbers<[1], [0], [0], [1], [0, 0, 1, 1], [], []>} : vector<104x128xf32>, vector<128x128xf32>, vector<104x128xf32> -> vector<104x128xf32>
    %c0_11 = arith.constant 0 : index
    %c0_12 = arith.constant 0 : index
    %16 = vector.load %arg5[%c0_11, %c0_12] : memref<1x128xf32, #tpu.memory_space<vmem>>, vector<1x128xf32>
    %17 = vector.broadcast %16 : vector<1x128xf32> to vector<104x128xf32>
    %18 = arith.addf %15, %17 : vector<104x128xf32>
    %cst_13 = arith.constant 5.000000e-01 : f32
    %19 = vector.broadcast %cst_13 : f32 to vector<104x128xf32>
    %20 = arith.mulf %19, %18 : vector<104x128xf32>
    %cst_14 = arith.constant 0.707106769 : f32
    %21 = vector.broadcast %cst_14 : f32 to vector<104x128xf32>
    %22 = arith.mulf %18, %21 : vector<104x128xf32>
    %23 = math.erf %22 : vector<104x128xf32>
    %cst_15 = arith.constant 1.000000e+00 : f32
    %24 = vector.broadcast %cst_15 : f32 to vector<104x128xf32>
    %25 = arith.addf %24, %23 : vector<104x128xf32>
    %26 = arith.mulf %20, %25 : vector<104x128xf32>
    %c0_16 = arith.constant 0 : index
    %c0_17 = arith.constant 0 : index
    %27 = vector.load %arg6[%c0_16, %c0_17] : memref<128x128xf32, #tpu.memory_space<vmem>>, vector<128x128xf32>
    %cst_18 = arith.constant dense<0.000000e+00> : vector<104x128xf32>
    %28 = tpu.matmul %26, %27, %cst_18 {dimension_numbers = #tpu.dot_dimension_numbers<[1], [0], [0], [1], [0, 0, 1, 1], [], []>} : vector<104x128xf32>, vector<128x128xf32>, vector<104x128xf32> -> vector<104x128xf32>
    %c0_19 = arith.constant 0 : index
    %c0_20 = arith.constant 0 : index
    %29 = vector.load %arg7[%c0_19, %c0_20] : memref<1x128xf32, #tpu.memory_space<vmem>>, vector<1x128xf32>
    %30 = vector.broadcast %29 : vector<1x128xf32> to vector<104x128xf32>
    %31 = arith.addf %28, %30 : vector<104x128xf32>
    %cst_21 = arith.constant 5.000000e-01 : f32
    %32 = vector.broadcast %cst_21 : f32 to vector<104x128xf32>
    %33 = arith.mulf %32, %31 : vector<104x128xf32>
    %cst_22 = arith.constant 0.707106769 : f32
    %34 = vector.broadcast %cst_22 : f32 to vector<104x128xf32>
    %35 = arith.mulf %31, %34 : vector<104x128xf32>
    %36 = math.erf %35 : vector<104x128xf32>
    %cst_23 = arith.constant 1.000000e+00 : f32
    %37 = vector.broadcast %cst_23 : f32 to vector<104x128xf32>
    %38 = arith.addf %37, %36 : vector<104x128xf32>
    %39 = arith.mulf %33, %38 : vector<104x128xf32>
    %c0_24 = arith.constant 0 : index
    %c0_25 = arith.constant 0 : index
    %40 = vector.load %arg8[%c0_24, %c0_25] : memref<128x24xf32, #tpu.memory_space<vmem>>, vector<128x24xf32>
    %cst_26 = arith.constant dense<0.000000e+00> : vector<104x24xf32>
    %41 = tpu.matmul %39, %40, %cst_26 {dimension_numbers = #tpu.dot_dimension_numbers<[1], [0], [0], [1], [0, 0, 1, 1], [], []>} : vector<104x128xf32>, vector<128x24xf32>, vector<104x24xf32> -> vector<104x24xf32>
    %c0_27 = arith.constant 0 : index
    %c0_28 = arith.constant 0 : index
    %42 = vector.load %arg9[%c0_27, %c0_28] : memref<1x24xf32, #tpu.memory_space<vmem>>, vector<1x24xf32>
    %43 = vector.broadcast %42 : vector<1x24xf32> to vector<104x24xf32>
    %44 = arith.addf %41, %43 : vector<104x24xf32>
    %c0_29 = arith.constant 0 : index
    %c0_30 = arith.constant 0 : index
    %45 = vector.load %arg10[%c0_29, %c0_30] : memref<104x24xf32, #tpu.memory_space<vmem>>, vector<104x24xf32>
    tpu.vector_store %arg10[%c0_29, %c0_30], %44 {strides = array<i32>} : memref<104x24xf32, #tpu.memory_space<vmem>>, vector<104x24xf32>,
    return
  }
  func.func @transform_0(%arg0: i32) -> (i32, i32) {
    %c0_i32 = arith.constant 0 : i32
    %c0_i32_0 = arith.constant 0 : i32
    return %arg0, %c0_i32 : i32, i32
  }
  func.func @transform_1(%arg0: i32) -> (i32, i32) {
    %c0_i32 = arith.constant 0 : i32
    %c0_i32_0 = arith.constant 0 : i32
    %c0_i32_1 = arith.constant 0 : i32
    return %c0_i32, %c0_i32_0 : i32, i32
  }
  func.func @transform_2(%arg0: i32) -> (i32, i32) {
    %c0_i32 = arith.constant 0 : i32
    %c0_i32_0 = arith.constant 0 : i32
    %c0_i32_1 = arith.constant 0 : i32
    return %c0_i32, %c0_i32_0 : i32, i32
  }
  func.func @transform_3(%arg0: i32) -> (i32, i32) {
    %c0_i32 = arith.constant 0 : i32
    %c0_i32_0 = arith.constant 0 : i32
    %c0_i32_1 = arith.constant 0 : i32
    return %c0_i32, %c0_i32_0 : i32, i32
  }
  func.func @transform_4(%arg0: i32) -> (i32, i32) {
    %c0_i32 = arith.constant 0 : i32
    %c0_i32_0 = arith.constant 0 : i32
    %c0_i32_1 = arith.constant 0 : i32
    return %c0_i32, %c0_i32_0 : i32, i32
  }
  func.func @transform_5(%arg0: i32) -> (i32, i32) {
    %c0_i32 = arith.constant 0 : i32
    %c0_i32_0 = arith.constant 0 : i32
    %c0_i32_1 = arith.constant 0 : i32
    return %c0_i32, %c0_i32_0 : i32, i32
  }
  func.func @transform_6(%arg0: i32) -> (i32, i32) {
    %c0_i32 = arith.constant 0 : i32
    %c0_i32_0 = arith.constant 0 : i32
    %c0_i32_1 = arith.constant 0 : i32
    return %c0_i32, %c0_i32_0 : i32, i32
  }
  func.func @transform_7(%arg0: i32) -> (i32, i32) {
    %c0_i32 = arith.constant 0 : i32
    %c0_i32_0 = arith.constant 0 : i32
    %c0_i32_1 = arith.constant 0 : i32
    return %c0_i32, %c0_i32_0 : i32, i32
  }
  func.func @transform_8(%arg0: i32) -> (i32, i32) {
    %c0_i32 = arith.constant 0 : i32
    %c0_i32_0 = arith.constant 0 : i32
    %c0_i32_1 = arith.constant 0 : i32
    return %c0_i32, %c0_i32_0 : i32, i32
  }
  func.func @transform_9(%arg0: i32) -> (i32, i32) {
    %c0_i32 = arith.constant 0 : i32
    %c0_i32_0 = arith.constant 0 : i32
    return %arg0, %c0_i32 : i32, i32
  }
}

</mosaic_0001>

<bundles_post_ra>
// kernel: tpu_custom_call.1
= control target key start
LH: loop header
LB: loop body
LE: loop exit
PB: predicated region body
PF: predicated region fallthrough
CT: control target
= control target key end

     0   :  { %s2301_s30 = smov 0   ;;  %s2303_s10 = smov 0   ;;  %s2854_s0 = inlined_call_operand.vmem [shape: f32[400,48], index: 0, kind: input, shape index: {}]   ;;  %s2855_s1 = inlined_call_operand.vmem [shape: f32[48,128], index: 1, kind: input, shape index: {}]   ;;  %s2856_s2 = inlined_call_operand.vmem [shape: f32[1,128], index: 2, kind: input, shape index: {}]   ;;  %s2857_s3 = inlined_call_operand.vmem [shape: f32[128,128], index: 3, kind: input, shape index: {}]   ;;  %s2858_s4 = inlined_call_operand.vmem [shape: f32[1,128], index: 4, kind: input, shape index: {}]   ;;  %s2859_s5 = inlined_call_operand.vmem [shape: f32[128,128], index: 5, kind: input, shape index: {}]   ;;  %s2860_s6 = inlined_call_operand.vmem [shape: f32[1,128], index: 6, kind: input, shape index: {}]   ;;  %s2861_s7 = inlined_call_operand.vmem [shape: f32[128,24], index: 7, kind: input, shape index: {}]   ;;  %s2862_s8 = inlined_call_operand.vmem [shape: f32[1,24], index: 8, kind: input, shape index: {}]   ;;  %s2863_s9 = inlined_call_operand.vmem [shape: f32[400,24], index: 9, kind: output, shape index: {}]  }
   0x1   :  { %s2305_s11 = smov 0  }
   0x2 LB: > { %s2314_s12 = sadd.s32 4294967295, %s2214_s11   ;;  %s2316_s13 = sadd.s32 1, %s2214_s11   ;;  %s2214_s11 = sphi %s2305_s11, %s2870_s11   ;;  %s2210_s10 = sphi %s2303_s10, %s2869_s10   ;;  %s2206_s30 = sphi %s2301_s30, %s2868_s30  }
   0x3   : > { %s217_s14 = ssub.s32 %s2214_s11, %s2316_s13  ;;  %s220_s15 = sadd.s32 1, %s2210_s10 }
   0x4   : > { %p218_p0 = scmp.eq.s32.totalorder %s217_s14, 0  ;;  %p230_p1 = scmp.ne.s32.totalorder %s2210_s10, %s2206_s30 }
   0x5   : > { %p231_p2 = scmp.eq.s32.totalorder %s2314_s12, 3  ;;  %p1486_p3 = scmp.ge.s32.totalorder %s2214_s11, 1 }
   0x6   : > { %s2324_s16 = scalar_select %p218_p0, %s2210_s10, %s220_s15  }
   0x7   : > { %p2326_p4 = por %p231_p2, %p230_p1  ;;  %p296_p5 = scmp.lt.s32.totalorder %s2214_s11, 5 }
   0x9   : > { %p297_p6 = pnand %p1486_p3, %p296_p5 }
   0xa   : > { %v367_v0 = vld [vmem:[%s2855_s1] sm:$0xff] (!%p297_p6)  ;;  %v368_v1 = vld [vmem:[%s2855_s1 + $0x8] sm:$0xff] (!%p297_p6)  ;;  %v369_v2 = vld [vmem:[%s2855_s1 + $0x10] sm:$0xff] (!%p297_p6)  ;;  %v2248_v3 = vmov (!%p297_p6), 0.0|0.0   ;;  %vm2249_vm0 = vmmov (!%p297_p6), 0   ;;  %v2250_v6 = vmov (!%p297_p6), 0.0  }
   0xb   : > { %300 = sbr.rel (%p297_p6) target bundleno = 1041 (0x411), region = 56  ;;  %1888 = vmatprep.subr.bf16.mxu0 (!%p297_p6), %v2248_v3  ;;  %v1889_v4 = vpack.c.bf16 (!%p297_p6), %v368_v1, %v367_v0  ;;  %v370_v5 = vld [vmem:[%s2855_s1 + $0x18] sm:$0xff] (!%p297_p6)  ;;  %1636 = vmatprep.mubr.msk.f32.mxu0 (!%p297_p6), %vm2249_vm0, %v2250_v6  ;;  %v615_v7 = vld [vmem:[%s2857_s3] sm:$0xff] (!%p297_p6)  ;;  %v616_v8 = vld [vmem:[%s2857_s3 + $0x8] sm:$0xff] (!%p297_p6)  ;;  %vm380_vm1 = vcmask (!%p297_p6), 392192   ;;  %s332_s25 = sand.u32 (!%p297_p6), 1, %s2206_s30  }
   0xc   : > { %s2346_s26 = smul.u32 (!%p297_p6), 13, %s2314_s12  ;;  %1897 = vmatprep.subr.bf16.mxu1 (!%p297_p6), %v2248_v3  ;;  %v617_v9 = vld [vmem:[%s2857_s3 + $0x10] sm:$0xff] (!%p297_p6)  ;;  %1707 = vmatprep.mubr.msk.f32.mxu1 (!%p297_p6), %vm2249_vm0, %v2250_v6  ;;  %v1892_v10 = vpack.c.bf16 (!%p297_p6), %v370_v5, %v369_v2  ;;  %v1898_v11 = vpack.c.bf16 (!%p297_p6), %v616_v8, %v615_v7  ;;  %v618_v12 = vld [vmem:[%s2857_s3 + $0x18] sm:$0xff] (!%p297_p6)  ;;  %v371_v13 = vld [vmem:[%s2855_s1 + $0x20] sm:$0xff] (!%p297_p6)  ;;  %vm1204_vm2 = vcmask (!%p297_p6), 195584  }
   0xd   : > { %1890 = vmatpush3.bf16.msra.mxu0 (!%p297_p6), %v1889_v4  ;;  %v372_v14 = vld [vmem:[%s2855_s1 + $0x28] sm:$0xff] (!%p297_p6)  ;;  %v1901_v15 = vpack.c.bf16 (!%p297_p6), %v618_v12, %v617_v9  ;;  %v619_v16 = vld [vmem:[%s2857_s3 + $0x20] sm:$0xff] (!%p297_p6)  ;;  %v621_v33 = vld [vmem:[%s2857_s3 + $0x30] sm:$0xff] (!%p297_p6)  ;;  %s1985_s27 = smul.u32 (!%p297_p6), 104, %s332_s25 }
   0xe   : > { %p340_p7 = scmp.lt.s32.totalorder (!%p297_p6), %s2346_s26, 49  ;;  %1891 = vmatprep.subr.bf16.mxu0 (!%p297_p6), %v2248_v3  ;;  %1899 = vmatpush3.bf16.msra.mxu1 (!%p297_p6), %v1898_v11  ;;  %v620_v17 = vld [vmem:[%s2857_s3 + $0x28] sm:$0xff] (!%p297_p6)  ;;  %v1895_v18 = vpack.c.bf16 (!%p297_p6), %v372_v14, %v371_v13  ;;  %v622_v34 = vld [vmem:[%s2857_s3 + $0x38] sm:$0xff] (!%p297_p6)  ;;  %v623_v36 = vld [vmem:[%s2857_s3 + $0x40] sm:$0xff] (!%p297_p6) }
   0xf   : > { %1900 = vmatprep.subr.bf16.mxu1 (!%p297_p6), %v2248_v3  ;;  %v1904_v19 = vpack.c.bf16 (!%p297_p6), %v620_v17, %v619_v16  ;;  %v1907_v35 = vpack.c.bf16 (!%p297_p6), %v622_v34, %v621_v33  ;;  %v624_v37 = vld [vmem:[%s2857_s3 + $0x48] sm:$0xff] (!%p297_p6)  ;;  %v625_v39 = vld [vmem:[%s2857_s3 + $0x50] sm:$0xff] (!%p297_p6)  ;;  %v626_v40 = vld [vmem:[%s2857_s3 + $0x58] sm:$0xff] (!%p297_p6) }
  0x10   : > { %v1910_v38 = vpack.c.bf16 (!%p297_p6), %v624_v37, %v623_v36  ;;  %v1913_v41 = vpack.c.bf16 (!%p297_p6), %v626_v40, %v625_v39  ;;  %v627_v42 = vld [vmem:[%s2857_s3 + $0x60] sm:$0xff] (!%p297_p6)  ;;  %v628_v43 = vld [vmem:[%s2857_s3 + $0x68] sm:$0xff] (!%p297_p6)  ;;  %v629_v45 = vld [vmem:[%s2857_s3 + $0x70] sm:$0xff] (!%p297_p6) }
  0x11   : > { %1893 = vmatpush3.bf16.msra.mxu0 (!%p297_p6), %v1892_v10  ;;  %v1916_v44 = vpack.c.bf16 (!%p297_p6), %v628_v43, %v627_v42  ;;  %v630_v46 = vld [vmem:[%s2857_s3 + $0x78] sm:$0xff] (!%p297_p6)  ;;  %v833_v48 = vld [vmem:[%s2859_s5] sm:$0xff] (!%p297_p6)  ;;  %v834_v49 = vld [vmem:[%s2859_s5 + $0x8] sm:$0xff] (!%p297_p6) }
  0x12   : > { %s341_s24 = scalar_select %p340_p7, %s2346_s26, 49  ;;  %1894 = vmatprep.subr.bf16.mxu0 %v2248_v3  ;;  %1902 = vmatpush3.bf16.msra.mxu1 %v1901_v15  ;;  %v1919_v47 = vpack.c.bf16 %v630_v46, %v629_v45  ;;  %v835_v50 = vld [vmem:[%s2859_s5 + $0x10] sm:$0xff]  ;;  %v1922_v51 = vpack.c.bf16 %v834_v49, %v833_v48  ;;  %v836_v52 = vld [vmem:[%s2859_s5 + $0x18] sm:$0xff]  ;;  %v837_v54 = vld [vmem:[%s2859_s5 + $0x20] sm:$0xff] }
  0x13   : > { %1903 = vmatprep.subr.bf16.mxu1 %v2248_v3  ;;  %v1925_v53 = vpack.c.bf16 %v836_v52, %v835_v50  ;;  %v838_v55 = vld [vmem:[%s2859_s5 + $0x28] sm:$0xff]  ;;  %v839_v57 = vld [vmem:[%s2859_s5 + $0x30] sm:$0xff]  ;;  %v840_v58 = vld [vmem:[%s2859_s5 + $0x38] sm:$0xff]  ;;  %s1226_s30 = ssub.s32 (%p2326_p4), 50, %s2346_s26  ;;  %s1517_s14 = smul.u32 (%p2326_p4), 104, %s2314_s12 }
  0x14   : > { %s1487_s11 = sshll.u32 %s341_s24, 3  ;;  %v1928_v56 = vpack.c.bf16 %v838_v55, %v837_v54  ;;  %v1931_v59 = vpack.c.bf16 %v840_v58, %v839_v57  ;;  %v841_v60 = vld [vmem:[%s2859_s5 + $0x40] sm:$0xff]  ;;  %v842_v61 = vld [vmem:[%s2859_s5 + $0x48] sm:$0xff]  ;;  %p1227_p8 = scmp.lt.s32.totalorder (%p2326_p4), %s1226_s30, 13 }
  0x15   : > { %s2383_s18 = scalar_lea.vmem %s2854_s0, %s1487_s11  ;;  %1896 = vmatpush3.bf16.msra.mxu0 %v1895_v18  ;;  %v1934_v62 = vpack.c.bf16 %v842_v61, %v841_v60  ;;  %v2513_v63 = vld [vmem:[%s2856_s2] ss:$0 sm:$0xff]  ;;  %s2737_s11 = scalar_lea.vmem [#allocation2], %s1985_s27  }
  0x16   : > { %v354_v20 = vld [vmem:[%s2383_s18] sm:$0xff]  ;;  %1921 = vmatprep.subr.bf16.mxu0 %v2248_v3  ;;  %1905 = vmatpush3.bf16.msra.mxu1 %v1904_v19  ;;  %v355_v21 = vld [vmem:[%s2383_s18 + $0x8] sm:$0xff]  ;;  %v356_v22 = vld [vmem:[%s2383_s18 + $0x10] sm:$0xff]  ;;  %s2772_s19 = scalar_lea.vmem (%p2326_p4), %s2863_s9, %s1517_s14  }
  0x17   : > { %1906 = vmatprep.subr.bf16.mxu1 %v2248_v3  ;;  %v357_v23 = vld [vmem:[%s2383_s18 + $0x18] sm:$0xff]  ;;  %v358_v24 = vld [vmem:[%s2383_s18 + $0x20] sm:$0xff]  ;;  %v359_v25 = vld [vmem:[%s2383_s18 + $0x28] sm:$0xff] }
  0x18   : > { %1637 = vmatmul.mubr.msk.f32.vlgmr.msra.gmra.mrb[0].mxu0 %vm380_vm1, %v354_v20  ;;  %v360_v26 = vld [vmem:[%s2383_s18 + $0x30] sm:$0xff]  ;;  %v361_v27 = vld [vmem:[%s2383_s18 + $0x38] sm:$0xff]  ;;  %v362_v28 = vld [vmem:[%s2383_s18 + $0x40] sm:$0xff] }
  0x19   : > { %1639 = vmatprep.mubr.msk.f32.mxu0 %vm2249_vm0, %v2250_v6  ;;  %v363_v29 = vld [vmem:[%s2383_s18 + $0x48] sm:$0xff]  ;;  %v364_v30 = vld [vmem:[%s2383_s18 + $0x50] sm:$0xff]  ;;  %v365_v31 = vld [vmem:[%s2383_s18 + $0x58] sm:$0xff]  ;;  %1923 = vmatpush3.bf16.msra.mxu0 %v1922_v51 }
  0x1a   : > { %v366_v32 = vld [vmem:[%s2383_s18 + $0x60] sm:$0xff]  ;;  %1908 = vmatpush3.bf16.msra.mxu1 %v1907_v35  ;;  %1924 = vmatprep.subr.bf16.mxu0 %v2248_v3 }
  0x1b   : > { %1909 = vmatprep.subr.bf16.mxu1 %v2248_v3 }
  0x1c   : > { %1640 = vmatmul.mubr.msk.f32.gmra.mrb[2].mxu0 %vm380_vm1, %v355_v21 }
  0x1d   : > { %1642 = vmatprep.mubr.msk.f32.mxu0 %vm2249_vm0, %v2250_v6  ;;  %1926 = vmatpush3.bf16.msra.mxu0 %v1925_v53 }
  0x1e   : > { %1911 = vmatpush3.bf16.msra.mxu1 %v1910_v38  ;;  %1927 = vmatprep.subr.bf16.mxu0 %v2248_v3 }
  0x1f   : > { %1912 = vmatprep.subr.bf16.mxu1 %v2248_v3 }
  0x20   : > { %1643 = vmatmul.mubr.msk.f32.gmra.mrb[4].mxu0 %vm380_vm1, %v356_v22 }
  0x21   : > { %1645 = vmatprep.mubr.msk.f32.mxu0 %vm2249_vm0, %v2250_v6  ;;  %1929 = vmatpush3.bf16.msra.mxu0 %v1928_v56 }
  0x22   : > { %1914 = vmatpush3.bf16.msra.mxu1 %v1913_v41  ;;  %1930 = vmatprep.subr.bf16.mxu0 %v2248_v3 }
  0x23   : > { %1915 = vmatprep.subr.bf16.mxu1 %v2248_v3 }
  0x24   : > { %1646 = vmatmul.mubr.msk.f32.gmra.mrb[6].mxu0 %vm380_vm1, %v357_v23 }
  0x25   : > { %1648 = vmatprep.mubr.msk.f32.mxu0 %vm2249_vm0, %v2250_v6  ;;  %1932 = vmatpush3.bf16.msra.mxu0 %v1931_v59 }
  0x26   : > { %1917 = vmatpush3.bf16.msra.mxu1 %v1916_v44  ;;  %1933 = vmatprep.subr.bf16.mxu0 %v2248_v3 }
  0x27   : > { %1918 = vmatprep.subr.bf16.mxu1 %v2248_v3 }
  0x28   : > { %1649 = vmatmul.mubr.msk.f32.gmra.mrb[8].mxu0 %vm380_vm1, %v358_v24 }
  0x29   : > { %1651 = vmatprep.mubr.msk.f32.mxu0 %vm2249_vm0, %v2250_v6  ;;  %1935 = vmatpush3.bf16.msra.mxu0 %v1934_v62 }
  0x2a   : > { %1920 = vmatpush3.bf16.msra.mxu1 %v1919_v47  ;;  %1936 = vmatprep.subr.bf16.mxu0 %v2248_v3 }
  0x2b   : > { %1969 = vmatprep.subr.bf16.mxu1 %v2248_v3 }
  0x2c   : > { %1652 = vmatmul.mubr.msk.f32.gmra.mrb[10].mxu0 %vm380_vm1, %v359_v25 }
  0x2d   : > { %1654 = vmatprep.mubr.msk.f32.mxu0 %vm2249_vm0, %v2250_v6 }
  0x30   : > { %1655 = vmatmul.mubr.msk.f32.gmra.mrb[12].mxu0 %vm380_vm1, %v360_v26 }
  0x31   : > { %1657 = vmatprep.mubr.msk.f32.mxu0 %vm2249_vm0, %v2250_v6 }
  0x34   : > { %1658 = vmatmul.mubr.msk.f32.gmra.mrb[14].mxu0 %vm380_vm1, %v361_v27 }
  0x35   : > { %1660 = vmatprep.mubr.msk.f32.mxu0 %vm2249_vm0, %v2250_v6 }
  0x38   : > { %1661 = vmatmul.mubr.msk.f32.gmra.mrb[16].mxu0 %vm380_vm1, %v362_v28 }
  0x39   : > { %1663 = vmatprep.mubr.msk.f32.mxu0 %vm2249_vm0, %v2250_v6 }
  0x3c   : > { %1664 = vmatmul.mubr.msk.f32.gmra.mrb[18].mxu0 %vm380_vm1, %v363_v29 }
  0x3d   : > { %1666 = vmatprep.mubr.msk.f32.mxu0 %vm2249_vm0, %v2250_v6 }
  0x40   : > { %1667 = vmatmul.mubr.msk.f32.gmra.mrb[20].mxu0 %vm380_vm1, %v364_v30 }
  0x41   : > { %1669 = vmatprep.mubr.msk.f32.mxu0 %vm2249_vm0, %v2250_v6 }
  0x44   : > { %1670 = vmatmul.mubr.msk.f32.gmra.mrb[22].mxu0 %vm380_vm1, %v365_v31 }
  0x45   : > { %1672 = vmatprep.mubr.msk.f32.mxu0 %vm2249_vm0, %v2250_v6 }
  0x48   : > { %1673 = vmatmul.mubr.msk.f32.gmra.mrb[24].mxu0 %vm380_vm1, %v366_v32 }
  0x49   : > { %1778 = vmatprep.mubr.msk.f32.mxu0 %vm2249_vm0, %v2250_v6 }
  0xeb   : > { %v486_v0 = vpop.f32.mrb[0].mxu0 }
  0xec   : > { %v487_v1 = vadd.f32 %v2513_v63, %v486_v0  ;;  %v1638_v2 = vpop.f32.mrb[1].mxu0 }
  0xee   : > { %v563_v4 = vmul.f32 0.70710677, %v487_v1  ;;  %v550_v19 = vmul.f32 0.5, %v487_v1 }
  0xef   : > { %v491_v5 = vpop.f32.mrb[2].mxu0 }
  0xf0   : > { %2078 = verf.f32 %v563_v4  ;;  %v492_v7 = vadd.f32 %v2513_v63, %v491_v5  ;;  %v1641_v8 = vpop.f32.mrb[3].mxu0 }
  0xf2   : > { %v564_v9 = vmul.f32 0.70710677, %v492_v7  ;;  %v551_v27 = vmul.f32 0.5, %v492_v7 }
  0xf3   : > { %v496_v10 = vpop.f32.mrb[4].mxu0 }
  0xf4   : > { %2080 = verf.f32 %v564_v9  ;;  %v497_v11 = vadd.f32 %v2513_v63, %v496_v10  ;;  %v1644_v12 = vpop.f32.mrb[5].mxu0 }
  0xf6   : > { %v565_v13 = vmul.f32 0.70710677, %v497_v11  ;;  %v552_v35 = vmul.f32 0.5, %v497_v11 }
  0xf7   : > { %v501_v14 = vpop.f32.mrb[6].mxu0 }
  0xf8   : > { %2082 = verf.f32 %v565_v13  ;;  %v502_v15 = vadd.f32 %v2513_v63, %v501_v14  ;;  %v1647_v16 = vpop.f32.mrb[7].mxu0 }
  0xfa   : > { %v2079_v17 = vpop.eup %2078  ;;  %v566_v18 = vmul.f32 0.70710677, %v502_v15  ;;  %v553_v43 = vmul.f32 0.5, %v502_v15 }
  0xfb   : > { %v589_v20 = vadd.f32 1.0, %v2079_v17  ;;  %v506_v21 = vpop.f32.mrb[8].mxu0 }
  0xfc   : > { %2084 = verf.f32 %v566_v18  ;;  %v507_v22 = vadd.f32 %v2513_v63, %v506_v21  ;;  %v1650_v23 = vpop.f32.mrb[9].mxu0 }
  0xfd   : > { %v602_v24 = vmul.f32 %v589_v20, %v550_v19 }
  0xfe   : > { %v2081_v25 = vpop.eup %2080  ;;  %v567_v26 = vmul.f32 0.70710677, %v507_v22  ;;  %v554_v51 = vmul.f32 0.5, %v507_v22 }
  0xff   : > { %v590_v28 = vadd.f32 1.0, %v2081_v25  ;;  %v511_v29 = vpop.f32.mrb[10].mxu0  ;;  %1708 = vmatmul.mubr.f32.vlgmr.msra.gmra.mrb[0].mxu1 %v602_v24 }
 0x100   : > { %2086 = verf.f32 %v567_v26  ;;  %v512_v30 = vadd.f32 %v2513_v63, %v511_v29  ;;  %v1653_v31 = vpop.f32.mrb[11].mxu0  ;;  %1710 = vmatprep.mubr.msk.f32.mxu1 %vm2249_vm0, %v2250_v6 }
 0x101   : > { %v603_v32 = vmul.f32 %v590_v28, %v551_v27 }
 0x102   : > { %v2083_v33 = vpop.eup %2082  ;;  %v568_v34 = vmul.f32 0.70710677, %v512_v30  ;;  %v555_v59 = vmul.f32 0.5, %v512_v30 }
 0x103   : > { %v591_v36 = vadd.f32 1.0, %v2083_v33  ;;  %v516_v37 = vpop.f32.mrb[12].mxu0  ;;  %1711 = vmatmul.mubr.f32.gmra.mrb[2].mxu1 %v603_v32 }
 0x104   : > { %2088 = verf.f32 %v568_v34  ;;  %v517_v38 = vadd.f32 %v2513_v63, %v516_v37  ;;  %v1656_v39 = vpop.f32.mrb[13].mxu0  ;;  %1713 = vmatprep.mubr.msk.f32.mxu1 %vm2249_vm0, %v2250_v6 }
 0x105   : > { %v604_v40 = vmul.f32 %v591_v36, %v552_v35 }
 0x106   : > { %v2085_v41 = vpop.eup %2084  ;;  %v569_v42 = vmul.f32 0.70710677, %v517_v38  ;;  %v556_v5 = vmul.f32 0.5, %v517_v38 }
 0x107   : > { %v592_v44 = vadd.f32 1.0, %v2085_v41  ;;  %v521_v45 = vpop.f32.mrb[14].mxu0  ;;  %1714 = vmatmul.mubr.f32.gmra.mrb[4].mxu1 %v604_v40 }
 0x108   : > { %2090 = verf.f32 %v569_v42  ;;  %v522_v46 = vadd.f32 %v2513_v63, %v521_v45  ;;  %v1659_v47 = vpop.f32.mrb[15].mxu0  ;;  %1716 = vmatprep.mubr.msk.f32.mxu1 %vm2249_vm0, %v2250_v6  ;;  %v844_v45 = vld [vmem:[%s2859_s5 + $0x58] sm:$0xff] }
 0x109   : > { %v605_v48 = vmul.f32 %v592_v44, %v553_v43  ;;  %v843_v44 = vld [vmem:[%s2859_s5 + $0x50] sm:$0xff]  ;;  %v845_v47 = vld [vmem:[%s2859_s5 + $0x60] sm:$0xff] }
 0x10a   : > { %v2087_v49 = vpop.eup %2086  ;;  %v570_v50 = vmul.f32 0.70710677, %v522_v46  ;;  %v557_v14 = vmul.f32 0.5, %v522_v46  ;;  %v1937_v46 = vpack.c.bf16 %v844_v45, %v843_v44 }
 0x10b   : > { %v593_v52 = vadd.f32 1.0, %v2087_v49  ;;  %v526_v53 = vpop.f32.mrb[16].mxu0  ;;  %1717 = vmatmul.mubr.f32.gmra.mrb[6].mxu1 %v605_v48  ;;  %v846_v48 = vld [vmem:[%s2859_s5 + $0x68] sm:$0xff] }
 0x10c   : > { %2092 = verf.f32 %v570_v50  ;;  %v527_v54 = vadd.f32 %v2513_v63, %v526_v53  ;;  %v1662_v55 = vpop.f32.mrb[17].mxu0  ;;  %1719 = vmatprep.mubr.msk.f32.mxu1 %vm2249_vm0, %v2250_v6  ;;  %1938 = vmatpush3.bf16.msra.mxu0 %v1937_v46  ;;  %v1940_v49 = vpack.c.bf16 %v846_v48, %v845_v47  ;;  %v847_v50 = vld [vmem:[%s2859_s5 + $0x70] sm:$0xff]  ;;  %v1051_v53 = vld [vmem:[%s2861_s7] sm:$0xff] }
 0x10d   : > { %v606_v56 = vmul.f32 %v593_v52, %v554_v51  ;;  %1939 = vmatprep.subr.bf16.mxu0 %v2248_v3  ;;  %v848_v51 = vld [vmem:[%s2859_s5 + $0x78] sm:$0xff] }
 0x10e   : > { %v2089_v57 = vpop.eup %2088  ;;  %v571_v58 = vmul.f32 0.70710677, %v527_v54  ;;  %v558_v22 = vmul.f32 0.5, %v527_v54  ;;  %v1943_v52 = vpack.c.bf16 %v848_v51, %v847_v50  ;;  %v1052_v54 = vld [vmem:[%s2861_s7 + $0x8] sm:$0xff] }
 0x10f   : > { %v594_v60 = vadd.f32 1.0, %v2089_v57  ;;  %v531_v61 = vpop.f32.mrb[18].mxu0  ;;  %1720 = vmatmul.mubr.f32.gmra.mrb[8].mxu1 %v606_v56  ;;  %v1946_v55 = vpack.c.bf16 %v1052_v54, %v1051_v53  ;;  %v1053_v56 = vld [vmem:[%s2861_s7 + $0x10] sm:$0xff]  ;;  %v1054_v57 = vld [vmem:[%s2861_s7 + $0x18] sm:$0xff] }
 0x110   : > { %2094 = verf.f32 %v571_v58  ;;  %v532_v62 = vadd.f32 %v2513_v63, %v531_v61  ;;  %v1665_v0 = vpop.f32.mrb[19].mxu0  ;;  %1722 = vmatprep.mubr.msk.f32.mxu1 %vm2249_vm0, %v2250_v6  ;;  %1941 = vmatpush3.bf16.msra.mxu0 %v1940_v49  ;;  %v2588_v58 = vpack.c.bf16 %v1054_v57, %v1053_v56 }
 0x111   : > { %v607_v1 = vmul.f32 %v594_v60, %v555_v59  ;;  %1942 = vmatprep.subr.bf16.mxu0 %v2248_v3  ;;  %1977 = vmatpush3.bf16.msra.mxu1 %v1946_v55  ;;  %v1055_v59 = vld [vmem:[%s2861_s7 + $0x20] sm:$0xff]  ;;  %v1056_v60 = vld [vmem:[%s2861_s7 + $0x28] sm:$0xff]  ;;  %v1058_v0 = vld [vmem:[%s2861_s7 + $0x38] sm:$0xff] }
 0x112   : > { %v2091_v2 = vpop.eup %2090  ;;  %v572_v4 = vmul.f32 0.70710677, %v532_v62  ;;  %v559_v30 = vmul.f32 0.5, %v532_v62  ;;  %1970 = vmatprep.subr.bf16.mxu1 %v2248_v3  ;;  %v2598_v61 = vpack.c.bf16 %v1056_v60, %v1055_v59  ;;  %v1057_v62 = vld [vmem:[%s2861_s7 + $0x30] sm:$0xff] }
 0x113   : > { %v595_v7 = vadd.f32 1.0, %v2091_v2  ;;  %v536_v8 = vpop.f32.mrb[20].mxu0  ;;  %1723 = vmatmul.mubr.f32.gmra.mrb[10].mxu1 %v607_v1  ;;  %v2608_v1 = vpack.c.bf16 %v1058_v0, %v1057_v62  ;;  %v2615_v2 = vld [vmem:[%s2858_s4] ss:$0 sm:$0xff] }
 0x114   : > { %2096 = verf.f32 %v572_v4  ;;  %v537_v9 = vadd.f32 %v2513_v63, %v536_v8  ;;  %v1668_v10 = vpop.f32.mrb[21].mxu0  ;;  %1725 = vmatprep.mubr.msk.f32.mxu1 %vm2249_vm0, %v2250_v6  ;;  %1944 = vmatpush3.bf16.msra.mxu0 %v1943_v52 }
 0x115   : > { %v608_v11 = vmul.f32 %v595_v7, %v556_v5  ;;  %1945 = vmatprep.subr.bf16.mxu0 %v2248_v3  ;;  %1978 = vmatpush3.bf16.msra.mxu1 %v2588_v58 }
 0x116   : > { %v2093_v12 = vpop.eup %2092  ;;  %v573_v13 = vmul.f32 0.70710677, %v537_v9  ;;  %v560_v34 = vmul.f32 0.5, %v537_v9  ;;  %1971 = vmatprep.subr.bf16.mxu1 %v2248_v3 }
 0x117   : > { %v596_v15 = vadd.f32 1.0, %v2093_v12  ;;  %v541_v16 = vpop.f32.mrb[22].mxu0  ;;  %1726 = vmatmul.mubr.f32.gmra.mrb[12].mxu1 %v608_v11 }
 0x118   : > { %2098 = verf.f32 %v573_v13  ;;  %v542_v17 = vadd.f32 %v2513_v63, %v541_v16  ;;  %v1671_v18 = vpop.f32.mrb[23].mxu0  ;;  %1728 = vmatprep.mubr.msk.f32.mxu1 %vm2249_vm0, %v2250_v6 }
 0x119   : > { %v609_v19 = vmul.f32 %v596_v15, %v557_v14  ;;  %1979 = vmatpush3.bf16.msra.mxu1 %v2598_v61 }
 0x11a   : > { %v2095_v20 = vpop.eup %2094  ;;  %v574_v21 = vmul.f32 0.70710677, %v542_v17  ;;  %v561_v37 = vmul.f32 0.5, %v542_v17  ;;  %1972 = vmatprep.subr.bf16.mxu1 %v2248_v3 }
 0x11b   : > { %v597_v23 = vadd.f32 1.0, %v2095_v20  ;;  %v546_v24 = vpop.f32.mrb[24].mxu0  ;;  %1729 = vmatmul.mubr.f32.gmra.mrb[14].mxu1 %v609_v19 }
 0x11c   : > { %2100 = verf.f32 %v574_v21  ;;  %v547_v25 = vadd.f32 %v2513_v63, %v546_v24  ;;  %v1674_v26 = vpop.f32.mrb[25].mxu0  ;;  %1731 = vmatprep.mubr.msk.f32.mxu1 %vm2249_vm0, %v2250_v6 }
 0x11d   : > { %v610_v27 = vmul.f32 %v597_v23, %v558_v22  ;;  %1980 = vmatpush3.bf16.msra.mxu1 %v2608_v1 }
 0x11e   : > { %v2097_v28 = vpop.eup %2096  ;;  %v575_v29 = vmul.f32 0.70710677, %v547_v25  ;;  %v562_v41 = vmul.f32 0.5, %v547_v25  ;;  %1973 = vmatprep.subr.bf16.mxu1 %v2248_v3 }
 0x11f   : > { %v598_v31 = vadd.f32 1.0, %v2097_v28  ;;  %1732 = vmatmul.mubr.f32.gmra.mrb[16].mxu1 %v610_v27 }
 0x120   : > { %2102 = verf.f32 %v575_v29  ;;  %1734 = vmatprep.mubr.msk.f32.mxu1 %vm2249_vm0, %v2250_v6 }
 0x121   : > { %v611_v32 = vmul.f32 %v598_v31, %v559_v30 }
 0x122   : > { %v2099_v33 = vpop.eup %2098 }
 0x123   : > { %v599_v35 = vadd.f32 1.0, %v2099_v33  ;;  %1735 = vmatmul.mubr.f32.gmra.mrb[18].mxu1 %v611_v32 }
 0x124   : > { %1737 = vmatprep.mubr.msk.f32.mxu1 %vm2249_vm0, %v2250_v6 }
 0x125   : > { %v612_v63 = vmul.f32 %v599_v35, %v560_v34 }
 0x126   : > { %v2101_v36 = vpop.eup %2100 }
 0x127   : > { %v600_v38 = vadd.f32 1.0, %v2101_v36  ;;  %1738 = vmatmul.mubr.f32.gmra.mrb[20].mxu1 %v612_v63 }
 0x128   : > { %1740 = vmatprep.mubr.msk.f32.mxu1 %vm2249_vm0, %v2250_v6 }
 0x129   : > { %v613_v39 = vmul.f32 %v600_v38, %v561_v37 }
 0x12a   : > { %v2103_v40 = vpop.eup %2102 }
 0x12b   : > { %v601_v42 = vadd.f32 1.0, %v2103_v40  ;;  %1741 = vmatmul.mubr.f32.gmra.mrb[22].mxu1 %v613_v39 }
 0x12c   : > { %1743 = vmatprep.mubr.msk.f32.mxu1 %vm2249_vm0, %v2250_v6 }
 0x12d   : > { %v614_v43 = vmul.f32 %v601_v42, %v562_v41 }
 0x12f   : > { %1744 = vmatmul.mubr.f32.gmra.mrb[24].mxu1 %v614_v43 }
 0x130   : > { %1855 = vmatprep.mubr.msk.f32.mxu1 %vm2249_vm0, %v2250_v6 }
 0x1d2   : > { %v704_v4 = vpop.f32.mrb[0].mxu1 }
 0x1d3   : > { %v705_v5 = vadd.f32 %v2615_v2, %v704_v4  ;;  %v1709_v7 = vpop.f32.mrb[1].mxu1 }
 0x1d5   : > { %v781_v8 = vmul.f32 0.70710677, %v705_v5  ;;  %v768_v22 = vmul.f32 0.5, %v705_v5 }
 0x1d6   : > { %v709_v9 = vpop.f32.mrb[2].mxu1 }
 0x1d7   : > { %2104 = verf.f32 %v781_v8  ;;  %v710_v10 = vadd.f32 %v2615_v2, %v709_v9  ;;  %v1712_v11 = vpop.f32.mrb[3].mxu1 }
 0x1d9   : > { %v782_v12 = vmul.f32 0.70710677, %v710_v10  ;;  %v769_v30 = vmul.f32 0.5, %v710_v10 }
 0x1da   : > { %v714_v13 = vpop.f32.mrb[4].mxu1 }
 0x1db   : > { %2106 = verf.f32 %v782_v12  ;;  %v715_v14 = vadd.f32 %v2615_v2, %v714_v13  ;;  %v1715_v15 = vpop.f32.mrb[5].mxu1 }
 0x1dd   : > { %v783_v16 = vmul.f32 0.70710677, %v715_v14  ;;  %v770_v37 = vmul.f32 0.5, %v715_v14 }
 0x1de   : > { %v719_v17 = vpop.f32.mrb[6].mxu1 }
 0x1df   : > { %2108 = verf.f32 %v783_v16  ;;  %v720_v18 = vadd.f32 %v2615_v2, %v719_v17  ;;  %v1718_v19 = vpop.f32.mrb[7].mxu1 }
 0x1e1   : > { %v2105_v20 = vpop.eup %2104  ;;  %v784_v21 = vmul.f32 0.70710677, %v720_v18  ;;  %v771_v45 = vmul.f32 0.5, %v720_v18 }
 0x1e2   : > { %v807_v23 = vadd.f32 1.0, %v2105_v20  ;;  %v724_v24 = vpop.f32.mrb[8].mxu1 }
 0x1e3   : > { %2110 = verf.f32 %v784_v21  ;;  %v725_v25 = vadd.f32 %v2615_v2, %v724_v24  ;;  %v1721_v26 = vpop.f32.mrb[9].mxu1 }
 0x1e4   : > { %v820_v27 = vmul.f32 %v807_v23, %v768_v22 }
 0x1e5   : > { %v2107_v28 = vpop.eup %2106  ;;  %v785_v29 = vmul.f32 0.70710677, %v725_v25  ;;  %v772_v53 = vmul.f32 0.5, %v725_v25 }
 0x1e6   : > { %v808_v31 = vadd.f32 1.0, %v2107_v28  ;;  %v729_v32 = vpop.f32.mrb[10].mxu1  ;;  %1779 = vmatmul.mubr.f32.vlgmr.msra.gmra.mrb[26].mxu0 %v820_v27 }
 0x1e7   : > { %2112 = verf.f32 %v785_v29  ;;  %v730_v33 = vadd.f32 %v2615_v2, %v729_v32  ;;  %v1724_v34 = vpop.f32.mrb[11].mxu1  ;;  %1781 = vmatprep.mubr.msk.f32.mxu0 %vm2249_vm0, %v2250_v6  ;;  %1947 = vmatpush3.bf16.msra.mxu0 %v1946_v55 }
 0x1e8   : > { %v821_v35 = vmul.f32 %v808_v31, %v769_v30  ;;  %1948 = vmatprep.subr.bf16.mxu0 %v2248_v3 }
 0x1e9   : > { %v2109_v63 = vpop.eup %2108  ;;  %v786_v36 = vmul.f32 0.70710677, %v730_v33 }
 0x1ea   : > { %v809_v38 = vadd.f32 1.0, %v2109_v63  ;;  %v734_v39 = vpop.f32.mrb[12].mxu1  ;;  %1782 = vmatmul.mubr.f32.gmra.mrb[28].mxu0 %v821_v35 }
 0x1eb   : > { %2114 = verf.f32 %v786_v36  ;;  %v735_v40 = vadd.f32 %v2615_v2, %v734_v39  ;;  %v1727_v41 = vpop.f32.mrb[13].mxu1  ;;  %1784 = vmatprep.mubr.msk.f32.mxu0 %vm2249_vm0, %v2250_v6  ;;  %1950 = vmatpush3.bf16.msra.mxu0 %v2588_v58 }
 0x1ec   : > { %v822_v42 = vmul.f32 %v809_v38, %v770_v37  ;;  %1951 = vmatprep.subr.bf16.mxu0 %v2248_v3 }
 0x1ed   : > { %v2111_v43 = vpop.eup %2110  ;;  %v787_v44 = vmul.f32 0.70710677, %v735_v40 }
 0x1ee   : > { %v810_v46 = vadd.f32 1.0, %v2111_v43  ;;  %v739_v47 = vpop.f32.mrb[14].mxu1  ;;  %1785 = vmatmul.mubr.f32.gmra.mrb[30].mxu0 %v822_v42 }
 0x1ef   : > { %2116 = verf.f32 %v787_v44  ;;  %v740_v48 = vadd.f32 %v2615_v2, %v739_v47  ;;  %v1730_v49 = vpop.f32.mrb[15].mxu1  ;;  %1787 = vmatprep.mubr.msk.f32.mxu0 %vm2249_vm0, %v2250_v6  ;;  %1953 = vmatpush3.bf16.msra.mxu0 %v2598_v61  ;;  %v773_v61 = vmul.f32 0.5, %v730_v33  ;;  %v1060_v47 = vld [vmem:[%s2861_s7 + $0x48] sm:$0xff] }
 0x1f0   : > { %v823_v50 = vmul.f32 %v810_v46, %v771_v45  ;;  %1954 = vmatprep.subr.bf16.mxu0 %v2248_v3  ;;  %v1059_v46 = vld [vmem:[%s2861_s7 + $0x40] sm:$0xff]  ;;  %v1061_v49 = vld [vmem:[%s2861_s7 + $0x50] sm:$0xff] }
 0x1f1   : > { %v2113_v51 = vpop.eup %2112  ;;  %v788_v52 = vmul.f32 0.70710677, %v740_v48  ;;  %v775_v17 = vmul.f32 0.5, %v740_v48  ;;  %v1958_v48 = vpack.c.bf16 %v1060_v47, %v1059_v46 }
 0x1f2   : > { %v811_v54 = vadd.f32 1.0, %v2113_v51  ;;  %v744_v55 = vpop.f32.mrb[16].mxu1  ;;  %1788 = vmatmul.mubr.f32.gmra.mrb[32].mxu0 %v823_v50  ;;  %v1062_v50 = vld [vmem:[%s2861_s7 + $0x58] sm:$0xff] }
 0x1f3   : > { %2118 = verf.f32 %v788_v52  ;;  %v745_v56 = vadd.f32 %v2615_v2, %v744_v55  ;;  %v1733_v57 = vpop.f32.mrb[17].mxu1  ;;  %1790 = vmatprep.mubr.msk.f32.mxu0 %vm2249_vm0, %v2250_v6  ;;  %1956 = vmatpush3.bf16.msra.mxu0 %v2608_v1  ;;  %v774_v1 = vmul.f32 0.5, %v735_v40  ;;  %v1961_v51 = vpack.c.bf16 %v1062_v50, %v1061_v49  ;;  %v1063_v52 = vld [vmem:[%s2861_s7 + $0x60] sm:$0xff]  ;;  %v1065_v55 = vld [vmem:[%s2861_s7 + $0x70] sm:$0xff] }
 0x1f4   : > { %v824_v58 = vmul.f32 %v811_v54, %v772_v53  ;;  %1957 = vmatprep.subr.bf16.mxu0 %v2248_v3  ;;  %1981 = vmatpush3.bf16.msra.mxu1 %v1958_v48  ;;  %v1064_v53 = vld [vmem:[%s2861_s7 + $0x68] sm:$0xff] }
 0x1f5   : > { %v2115_v59 = vpop.eup %2114  ;;  %v789_v60 = vmul.f32 0.70710677, %v745_v56  ;;  %v776_v25 = vmul.f32 0.5, %v745_v56  ;;  %1974 = vmatprep.subr.bf16.mxu1 %v2248_v3  ;;  %v1964_v54 = vpack.c.bf16 %v1064_v53, %v1063_v52  ;;  %v1066_v56 = vld [vmem:[%s2861_s7 + $0x78] sm:$0xff] }
 0x1f6   : > { %v812_v62 = vadd.f32 1.0, %v2115_v59  ;;  %v749_v0 = vpop.f32.mrb[18].mxu1  ;;  %1791 = vmatmul.mubr.f32.gmra.mrb[34].mxu0 %v824_v58  ;;  %v1967_v57 = vpack.c.bf16 %v1066_v56, %v1065_v55  ;;  %v2696_v58 = vld [vmem:[%s2860_s6] ss:$0 sm:$0xff] }
 0x1f7   : > { %2120 = verf.f32 %v789_v60  ;;  %v750_v4 = vadd.f32 %v2615_v2, %v749_v0  ;;  %v1736_v5 = vpop.f32.mrb[19].mxu1  ;;  %1793 = vmatprep.mubr.msk.f32.mxu0 %vm2249_vm0, %v2250_v6  ;;  %1959 = vmatpush3.bf16.msra.mxu0 %v1958_v48 }
 0x1f8   : > { %v825_v7 = vmul.f32 %v812_v62, %v773_v61  ;;  %1960 = vmatprep.subr.bf16.mxu0 %v2248_v3  ;;  %1982 = vmatpush3.bf16.msra.mxu1 %v1961_v51 }
 0x1f9   : > { %v2117_v8 = vpop.eup %2116  ;;  %v790_v9 = vmul.f32 0.70710677, %v750_v4  ;;  %v777_v33 = vmul.f32 0.5, %v750_v4  ;;  %1975 = vmatprep.subr.bf16.mxu1 %v2248_v3 }
 0x1fa   : > { %v813_v10 = vadd.f32 1.0, %v2117_v8  ;;  %v754_v11 = vpop.f32.mrb[20].mxu1  ;;  %1794 = vmatmul.mubr.f32.gmra.mrb[36].mxu0 %v825_v7 }
 0x1fb   : > { %2122 = verf.f32 %v790_v9  ;;  %v755_v12 = vadd.f32 %v2615_v2, %v754_v11  ;;  %v1739_v13 = vpop.f32.mrb[21].mxu1  ;;  %1796 = vmatprep.mubr.msk.f32.mxu0 %vm2249_vm0, %v2250_v6  ;;  %1962 = vmatpush3.bf16.msra.mxu0 %v1961_v51 }
 0x1fc   : > { %v826_v14 = vmul.f32 %v813_v10, %v774_v1  ;;  %1963 = vmatprep.subr.bf16.mxu0 %v2248_v3  ;;  %1983 = vmatpush3.bf16.msra.mxu1 %v1964_v54 }
 0x1fd   : > { %v2119_v15 = vpop.eup %2118  ;;  %v791_v16 = vmul.f32 0.70710677, %v755_v12  ;;  %v778_v36 = vmul.f32 0.5, %v755_v12  ;;  %1976 = vmatprep.subr.bf16.mxu1 %v2248_v3 }
 0x1fe   : > { %v814_v18 = vadd.f32 1.0, %v2119_v15  ;;  %v759_v19 = vpop.f32.mrb[22].mxu1  ;;  %1797 = vmatmul.mubr.f32.gmra.mrb[38].mxu0 %v826_v14 }
 0x1ff   : > { %2124 = verf.f32 %v791_v16  ;;  %v760_v20 = vadd.f32 %v2615_v2, %v759_v19  ;;  %v1742_v21 = vpop.f32.mrb[23].mxu1  ;;  %1799 = vmatprep.mubr.msk.f32.mxu0 %vm2249_vm0, %v2250_v6  ;;  %1965 = vmatpush3.bf16.msra.mxu0 %v1964_v54 }
 0x200   : > { %v827_v22 = vmul.f32 %v814_v18, %v775_v17  ;;  %1966 = vmatprep.subr.bf16.mxu0 %v2248_v3  ;;  %1984 = vmatpush3.bf16.msra.mxu1 %v1967_v57 }
 0x201   : > { %v2121_v23 = vpop.eup %2120  ;;  %v792_v24 = vmul.f32 0.70710677, %v760_v20  ;;  %v779_v39 = vmul.f32 0.5, %v760_v20 }
 0x202   : > { %v815_v26 = vadd.f32 1.0, %v2121_v23  ;;  %v764_v27 = vpop.f32.mrb[24].mxu1  ;;  %1800 = vmatmul.mubr.f32.gmra.mrb[40].mxu0 %v827_v22 }
 0x203   : > { %2126 = verf.f32 %v792_v24  ;;  %v765_v28 = vadd.f32 %v2615_v2, %v764_v27  ;;  %v1745_v29 = vpop.f32.mrb[25].mxu1  ;;  %1802 = vmatprep.mubr.msk.f32.mxu0 %vm2249_vm0, %v2250_v6  ;;  %1968 = vmatpush3.bf16.msra.mxu0 %v1967_v57 }
 0x204   : > { %v828_v30 = vmul.f32 %v815_v26, %v776_v25 }
 0x205   : > { %v2123_v31 = vpop.eup %2122  ;;  %v793_v32 = vmul.f32 0.70710677, %v765_v28  ;;  %v780_v43 = vmul.f32 0.5, %v765_v28 }
 0x206   : > { %v816_v34 = vadd.f32 1.0, %v2123_v31  ;;  %1803 = vmatmul.mubr.f32.gmra.mrb[42].mxu0 %v828_v30 }
 0x207   : > { %2128 = verf.f32 %v793_v32  ;;  %1805 = vmatprep.mubr.msk.f32.mxu0 %vm2249_vm0, %v2250_v6 }
 0x208   : > { %v829_v35 = vmul.f32 %v816_v34, %v777_v33 }
 0x209   : > { %v2125_v63 = vpop.eup %2124 }
 0x20a   : > { %v817_v37 = vadd.f32 1.0, %v2125_v63  ;;  %1806 = vmatmul.mubr.f32.gmra.mrb[44].mxu0 %v829_v35 }
 0x20b   : > { %1808 = vmatprep.mubr.msk.f32.mxu0 %vm2249_vm0, %v2250_v6 }
 0x20c   : > { %v830_v2 = vmul.f32 %v817_v37, %v778_v36 }
 0x20d   : > { %v2127_v38 = vpop.eup %2126 }
 0x20e   : > { %v818_v40 = vadd.f32 1.0, %v2127_v38  ;;  %1809 = vmatmul.mubr.f32.gmra.mrb[46].mxu0 %v830_v2 }
 0x20f   : > { %1811 = vmatprep.mubr.msk.f32.mxu0 %vm2249_vm0, %v2250_v6 }
 0x210   : > { %v831_v41 = vmul.f32 %v818_v40, %v779_v39 }
 0x211   : > { %v2129_v42 = vpop.eup %2128 }
 0x212   : > { %v819_v44 = vadd.f32 1.0, %v2129_v42  ;;  %1812 = vmatmul.mubr.f32.gmra.mrb[48].mxu0 %v831_v41 }
 0x213   : > { %1814 = vmatprep.mubr.msk.f32.mxu0 %vm2249_vm0, %v2250_v6 }
 0x214   : > { %v832_v45 = vmul.f32 %v819_v44, %v780_v43 }
 0x216   : > { %1815 = vmatmul.mubr.f32.gmra.mrb[50].mxu0 %v832_v45 }
 0x217   : > { %1849 = vmatprep.mubr.msk.f32.mxu0 %vm2249_vm0, %v2250_v6 }
 0x2b9   : > { %v922_v59 = vpop.f32.mrb[26].mxu0 }
 0x2ba   : > { %v923_v60 = vadd.f32 %v2696_v58, %v922_v59  ;;  %v1780_v61 = vpop.f32.mrb[27].mxu0 }
 0x2bc   : > { %v999_v62 = vmul.f32 0.70710677, %v923_v60  ;;  %v986_v15 = vmul.f32 0.5, %v923_v60 }
 0x2bd   : > { %v927_v0 = vpop.f32.mrb[28].mxu0 }
 0x2be   : > { %2130 = verf.f32 %v999_v62  ;;  %v928_v4 = vadd.f32 %v2696_v58, %v927_v0  ;;  %v1783_v5 = vpop.f32.mrb[29].mxu0 }
 0x2c0   : > { %v1000_v7 = vmul.f32 0.70710677, %v928_v4  ;;  %v987_v23 = vmul.f32 0.5, %v928_v4 }
 0x2c1   : > { %v932_v3 = vpop.f32.mrb[30].mxu0 }
 0x2c2   : > { %2132 = verf.f32 %v1000_v7  ;;  %v933_v8 = vadd.f32 %v2696_v58, %v932_v3  ;;  %v1786_v9 = vpop.f32.mrb[31].mxu0 }
 0x2c4   : > { %v1001_v1 = vmul.f32 0.70710677, %v933_v8  ;;  %v988_v31 = vmul.f32 0.5, %v933_v8 }
 0x2c5   : > { %v937_v10 = vpop.f32.mrb[32].mxu0 }
 0x2c6   : > { %2134 = verf.f32 %v1001_v1  ;;  %v938_v11 = vadd.f32 %v2696_v58, %v937_v10  ;;  %v1789_v12 = vpop.f32.mrb[33].mxu0 }
 0x2c8   : > { %v2131_v13 = vpop.eup %2130  ;;  %v1002_v14 = vmul.f32 0.70710677, %v938_v11  ;;  %v989_v2 = vmul.f32 0.5, %v938_v11 }
 0x2c9   : > { %v1025_v16 = vadd.f32 1.0, %v2131_v13  ;;  %v942_v17 = vpop.f32.mrb[34].mxu0 }
 0x2ca   : > { %2136 = verf.f32 %v1002_v14  ;;  %v943_v18 = vadd.f32 %v2696_v58, %v942_v17  ;;  %v1792_v19 = vpop.f32.mrb[35].mxu0 }
 0x2cb   : > { %v1038_v20 = vmul.f32 %v1025_v16, %v986_v15 }
 0x2cc   : > { %v2133_v21 = vpop.eup %2132  ;;  %v1003_v22 = vmul.f32 0.70710677, %v943_v18  ;;  %v990_v45 = vmul.f32 0.5, %v943_v18 }
 0x2cd   : > { %v1026_v24 = vadd.f32 1.0, %v2133_v21  ;;  %v947_v25 = vpop.f32.mrb[36].mxu0  ;;  %1850 = vmatmul.mubr.f32.vlgmr.msra.gmra.mrb[52].mxu0 %v1038_v20 }
 0x2ce   : > { %2138 = verf.f32 %v1003_v22  ;;  %v948_v26 = vadd.f32 %v2696_v58, %v947_v25  ;;  %v1795_v27 = vpop.f32.mrb[37].mxu0  ;;  %1852 = vmatprep.mubr.msk.f32.mxu0 %vm2249_vm0, %v2250_v6 }
 0x2cf   : > { %v1039_v28 = vmul.f32 %v1026_v24, %v987_v23 }
 0x2d0   : > { %v2135_v29 = vpop.eup %2134  ;;  %v1004_v30 = vmul.f32 0.70710677, %v948_v26  ;;  %v991_v53 = vmul.f32 0.5, %v948_v26 }
 0x2d1   : > { %v1027_v32 = vadd.f32 1.0, %v2135_v29  ;;  %v952_v33 = vpop.f32.mrb[38].mxu0  ;;  %1853 = vmatmul.mubr.f32.gmra.mrb[54].mxu0 %v1039_v28 }
 0x2d2   : > { %2140 = verf.f32 %v1004_v30  ;;  %v953_v34 = vadd.f32 %v2696_v58, %v952_v33  ;;  %v1798_v35 = vpop.f32.mrb[39].mxu0 }
 0x2d3   : > { %v1040_v63 = vmul.f32 %v1027_v32, %v988_v31 }
 0x2d4   : > { %v2137_v36 = vpop.eup %2136  ;;  %v1005_v37 = vmul.f32 0.70710677, %v953_v34  ;;  %v992_v62 = vmul.f32 0.5, %v953_v34 }
 0x2d5   : > { %v1028_v38 = vadd.f32 1.0, %v2137_v36  ;;  %v957_v39 = vpop.f32.mrb[40].mxu0  ;;  %1856 = vmatmul.mubr.f32.vlgmr.msra.gmra.mrb[26].mxu1 %v1040_v63 }
 0x2d6   : > { %2142 = verf.f32 %v1005_v37  ;;  %v958_v40 = vadd.f32 %v2696_v58, %v957_v39  ;;  %v1801_v41 = vpop.f32.mrb[41].mxu0  ;;  %1858 = vmatprep.mubr.msk.f32.mxu1 %vm2249_vm0, %v2250_v6 }
 0x2d7   : > { %v1041_v42 = vmul.f32 %v1028_v38, %v989_v2  ;;  %v1504_v2 = vld [vmem:[%s2862_s8] ss:$0 sm:$0xff] }
 0x2d8   : > { %v2139_v43 = vpop.eup %2138  ;;  %v1006_v44 = vmul.f32 0.70710677, %v958_v40  ;;  %v993_v1 = vmul.f32 0.5, %v958_v40 }
 0x2d9   : > { %v1029_v46 = vadd.f32 1.0, %v2139_v43  ;;  %v962_v47 = vpop.f32.mrb[42].mxu0  ;;  %1859 = vmatmul.mubr.f32.gmra.mrb[28].mxu1 %v1041_v42 }
 0x2da   : > { %2144 = verf.f32 %v1006_v44  ;;  %v963_v48 = vadd.f32 %v2696_v58, %v962_v47  ;;  %v1804_v49 = vpop.f32.mrb[43].mxu0  ;;  %1861 = vmatprep.mubr.msk.f32.mxu1 %vm2249_vm0, %v2250_v6 }
 0x2db   : > { %v1042_v50 = vmul.f32 %v1029_v46, %v990_v45 }
 0x2dc   : > { %v2141_v51 = vpop.eup %2140  ;;  %v1007_v52 = vmul.f32 0.70710677, %v963_v48  ;;  %v994_v17 = vmul.f32 0.5, %v963_v48 }
 0x2dd   : > { %v1030_v54 = vadd.f32 1.0, %v2141_v51  ;;  %v967_v55 = vpop.f32.mrb[44].mxu0  ;;  %1862 = vmatmul.mubr.f32.gmra.mrb[30].mxu1 %v1042_v50 }
 0x2de   : > { %2146 = verf.f32 %v1007_v52  ;;  %v968_v56 = vadd.f32 %v2696_v58, %v967_v55  ;;  %v1807_v57 = vpop.f32.mrb[45].mxu0  ;;  %1864 = vmatprep.mubr.msk.f32.mxu1 %vm2249_vm0, %v2250_v6 }
 0x2df   : > { %v1043_v59 = vmul.f32 %v1030_v54, %v991_v53 }
 0x2e0   : > { %v2143_v60 = vpop.eup %2142  ;;  %v1008_v61 = vmul.f32 0.70710677, %v968_v56  ;;  %v995_v25 = vmul.f32 0.5, %v968_v56 }
 0x2e1   : > { %v1031_v0 = vadd.f32 1.0, %v2143_v60  ;;  %v972_v4 = vpop.f32.mrb[46].mxu0  ;;  %1865 = vmatmul.mubr.f32.gmra.mrb[32].mxu1 %v1043_v59 }
 0x2e2   : > { %2148 = verf.f32 %v1008_v61  ;;  %v973_v5 = vadd.f32 %v2696_v58, %v972_v4  ;;  %v1810_v7 = vpop.f32.mrb[47].mxu0  ;;  %1867 = vmatprep.mubr.msk.f32.mxu1 %vm2249_vm0, %v2250_v6 }
 0x2e3   : > { %v1044_v3 = vmul.f32 %v1031_v0, %v992_v62 }
 0x2e4   : > { %v2145_v8 = vpop.eup %2144  ;;  %v1009_v9 = vmul.f32 0.70710677, %v973_v5  ;;  %v996_v29 = vmul.f32 0.5, %v973_v5 }
 0x2e5   : > { %v1032_v10 = vadd.f32 1.0, %v2145_v8  ;;  %v977_v11 = vpop.f32.mrb[48].mxu0  ;;  %1868 = vmatmul.mubr.f32.gmra.mrb[34].mxu1 %v1044_v3 }
 0x2e6   : > { %2150 = verf.f32 %v1009_v9  ;;  %v978_v12 = vadd.f32 %v2696_v58, %v977_v11  ;;  %v1813_v13 = vpop.f32.mrb[49].mxu0  ;;  %1870 = vmatprep.mubr.msk.f32.mxu1 %vm2249_vm0, %v2250_v6 }
 0x2e7   : > { %v1045_v14 = vmul.f32 %v1032_v10, %v993_v1 }
 0x2e8   : > { %v2147_v15 = vpop.eup %2146  ;;  %v1010_v16 = vmul.f32 0.70710677, %v978_v12  ;;  %v997_v32 = vmul.f32 0.5, %v978_v12 }
 0x2e9   : > { %v1033_v18 = vadd.f32 1.0, %v2147_v15  ;;  %v982_v19 = vpop.f32.mrb[50].mxu0  ;;  %1871 = vmatmul.mubr.f32.gmra.mrb[36].mxu1 %v1045_v14 }
 0x2ea   : > { %2152 = verf.f32 %v1010_v16  ;;  %v983_v20 = vadd.f32 %v2696_v58, %v982_v19  ;;  %v1816_v21 = vpop.f32.mrb[51].mxu0  ;;  %1873 = vmatprep.mubr.msk.f32.mxu1 %vm2249_vm0, %v2250_v6 }
 0x2eb   : > { %v1046_v22 = vmul.f32 %v1033_v18, %v994_v17 }
 0x2ec   : > { %v2149_v23 = vpop.eup %2148  ;;  %v1011_v24 = vmul.f32 0.70710677, %v983_v20  ;;  %v998_v63 = vmul.f32 0.5, %v983_v20 }
 0x2ed   : > { %v1034_v26 = vadd.f32 1.0, %v2149_v23  ;;  %1874 = vmatmul.mubr.f32.gmra.mrb[38].mxu1 %v1046_v22 }
 0x2ee   : > { %2154 = verf.f32 %v1011_v24  ;;  %1876 = vmatprep.mubr.msk.f32.mxu1 %vm2249_vm0, %v2250_v6 }
 0x2ef   : > { %v1047_v27 = vmul.f32 %v1034_v26, %v995_v25 }
 0x2f0   : > { %v2151_v28 = vpop.eup %2150 }
 0x2f1   : > { %v1035_v30 = vadd.f32 1.0, %v2151_v28  ;;  %1877 = vmatmul.mubr.f32.gmra.mrb[40].mxu1 %v1047_v27 }
 0x2f2   : > { %1879 = vmatprep.mubr.msk.f32.mxu1 %vm2249_vm0, %v2250_v6 }
 0x2f3   : > { %v1048_v58 = vmul.f32 %v1035_v30, %v996_v29 }
 0x2f4   : > { %v2153_v31 = vpop.eup %2152 }
 0x2f5   : > { %v1036_v33 = vadd.f32 1.0, %v2153_v31  ;;  %1880 = vmatmul.mubr.f32.gmra.mrb[42].mxu1 %v1048_v58 }
 0x2f6   : > { %1882 = vmatprep.mubr.msk.f32.mxu1 %vm2249_vm0, %v2250_v6 }
 0x2f7   : > { %v1049_v34 = vmul.f32 %v1036_v33, %v997_v32 }
 0x2f8   : > { %v2155_v35 = vpop.eup %2154 }
 0x2f9   : > { %v1037_v36 = vadd.f32 1.0, %v2155_v35  ;;  %1883 = vmatmul.mubr.f32.gmra.mrb[44].mxu1 %v1049_v34 }
 0x2fa   : > { %1885 = vmatprep.mubr.msk.f32.mxu1 %vm2249_vm0, %v2250_v6 }
 0x2fb   : > { %v1050_v37 = vmul.f32 %v1037_v36, %v998_v63 }
 0x2fd   : > { %1886 = vmatmul.mubr.f32.gmra.mrb[46].mxu1 %v1050_v37 }
 0x3a0   : > { %v1140_v38 = vpop.f32.mrb[52].mxu0 }
 0x3a1   : > { %v1141_v39 = vadd.f32 %v1504_v2, %v1140_v38  ;;  %v1851_v40 = vpop.f32.mrb[53].mxu0 }
 0x3a3   : > { %1205 = vst.msk [vmem:[%s2737_s11] sm:$0xff] %vm1204_vm2, %v1141_v39 }
 0x3a4   : > { %v1145_v6 = vpop.f32.mrb[54].mxu0 }
 0x3a5   : > { %v1146_v41 = vadd.f32 %v1504_v2, %v1145_v6  ;;  %v1854_v42 = vpop.f32.mrb[55].mxu0 }
 0x3a7   : > { %1206 = vst.msk [vmem:[%s2737_s11 + $0x8] sm:$0xff] %vm1204_vm2, %v1146_v41 }
 0x3a8   : > { %v1150_v43 = vpop.f32.mrb[26].mxu1 }
 0x3a9   : > { %v1151_v44 = vadd.f32 %v1504_v2, %v1150_v43  ;;  %v1857_v45 = vpop.f32.mrb[27].mxu1 }
 0x3ab   : > { %1207 = vst.msk [vmem:[%s2737_s11 + $0x10] sm:$0xff] %vm1204_vm2, %v1151_v44 }
 0x3ac   : > { %v1155_v46 = vpop.f32.mrb[28].mxu1 }
 0x3ad   : > { %v1156_v47 = vadd.f32 %v1504_v2, %v1155_v46  ;;  %v1860_v48 = vpop.f32.mrb[29].mxu1 }
 0x3af   : > { %1208 = vst.msk [vmem:[%s2737_s11 + $0x18] sm:$0xff] %vm1204_vm2, %v1156_v47 }
 0x3b0   : > { %v1160_v49 = vpop.f32.mrb[30].mxu1 }
 0x3b1   : > { %v1161_v50 = vadd.f32 %v1504_v2, %v1160_v49  ;;  %v1863_v51 = vpop.f32.mrb[31].mxu1 }
 0x3b3   : > { %1209 = vst.msk [vmem:[%s2737_s11 + $0x20] sm:$0xff] %vm1204_vm2, %v1161_v50 }
 0x3b4   : > { %v1165_v52 = vpop.f32.mrb[32].mxu1 }
 0x3b5   : > { %v1166_v53 = vadd.f32 %v1504_v2, %v1165_v52  ;;  %v1866_v54 = vpop.f32.mrb[33].mxu1 }
 0x3b7   : > { %1210 = vst.msk [vmem:[%s2737_s11 + $0x28] sm:$0xff] %vm1204_vm2, %v1166_v53 }
 0x3b8   : > { %v1170_v55 = vpop.f32.mrb[34].mxu1 }
 0x3b9   : > { %v1171_v56 = vadd.f32 %v1504_v2, %v1170_v55  ;;  %v1869_v57 = vpop.f32.mrb[35].mxu1 }
 0x3bb   : > { %1211 = vst.msk [vmem:[%s2737_s11 + $0x30] sm:$0xff] %vm1204_vm2, %v1171_v56 }
 0x3bc   : > { %v1175_v59 = vpop.f32.mrb[36].mxu1 }
 0x3bd   : > { %v1176_v60 = vadd.f32 %v1504_v2, %v1175_v59  ;;  %v1872_v61 = vpop.f32.mrb[37].mxu1 }
 0x3bf   : > { %1212 = vst.msk [vmem:[%s2737_s11 + $0x38] sm:$0xff] %vm1204_vm2, %v1176_v60 }
 0x3c0   : > { %v1180_v62 = vpop.f32.mrb[38].mxu1 }
 0x3c1   : > { %v1181_v0 = vadd.f32 %v1504_v2, %v1180_v62  ;;  %v1875_v4 = vpop.f32.mrb[39].mxu1 }
 0x3c3   : > { %1213 = vst.msk [vmem:[%s2737_s11 + $0x40] sm:$0xff] %vm1204_vm2, %v1181_v0 }
 0x3c4   : > { %v1185_v5 = vpop.f32.mrb[40].mxu1 }
 0x3c5   : > { %v1186_v7 = vadd.f32 %v1504_v2, %v1185_v5  ;;  %v1878_v3 = vpop.f32.mrb[41].mxu1 }
 0x3c7   : > { %1214 = vst.msk [vmem:[%s2737_s11 + $0x48] sm:$0xff] %vm1204_vm2, %v1186_v7 }
 0x3c8   : > { %v1190_v8 = vpop.f32.mrb[42].mxu1 }
 0x3c9   : > { %v1191_v9 = vadd.f32 %v1504_v2, %v1190_v8  ;;  %v1881_v1 = vpop.f32.mrb[43].mxu1 }
 0x3cb   : > { %1215 = vst.msk [vmem:[%s2737_s11 + $0x50] sm:$0xff] %vm1204_vm2, %v1191_v9 }
 0x3cc   : > { %v1195_v10 = vpop.f32.mrb[44].mxu1 }
 0x3cd   : > { %v1196_v11 = vadd.f32 %v1504_v2, %v1195_v10  ;;  %v1884_v12 = vpop.f32.mrb[45].mxu1  ;;  %1224 = sbr.rel (!%p2326_p4) target bundleno = 1041 (0x411), region = 60 }
 0x3cf   : > { %1216 = vst.msk [vmem:[%s2737_s11 + $0x58] sm:$0xff] %vm1204_vm2, %v1196_v11 }
 0x3d0   : > { %v1200_v13 = vpop.f32.mrb[46].mxu1 }
 0x3d1   : > { %v1201_v14 = vadd.f32 %v1504_v2, %v1200_v13  ;;  %v1887_v15 = vpop.f32.mrb[47].mxu1 }
 0x3d3   : > { %1217 = vst.msk [vmem:[%s2737_s11 + $0x60] sm:$0xff] %vm1204_vm2, %v1201_v14 }
 0x3d4   : > { %s2872_s30 = smov (!%p1227_p8, %s1226_s30), 13 }
 0x3d5   : > { %s1505_s20 = sshll.u32 %s2872_s30, 7 }
 0x3d6   : > { %p1508_p9 = scmp.eq.s32.totalorder %s1505_s20, 0 }
 0x3d7   : > { %2156 = sdivrem.u32 (!%p1508_p9), %s2872_s30, 13 }
 0x3d8   : > { %1235 = sbr.rel (%p1508_p9) target bundleno = 1041 (0x411), region = 64 }
 0x3e0   : > { %s2778_s17 = spop.drf %2156 }
 0x3e1   : > { %p1509_p10 = scmp.le.s32.totalorder %s2778_s17, 0 }
 0x3e2   : > { %s2865_s12 = smov (!%p1509_p10), %s2772_s19  ;;  %s2866_s26 = smov (!%p1509_p10), %s2737_s11 }
 0x3e3   : > { %1439 = sbr.rel (%p1509_p10) target bundleno = 1012 (0x3f4), region = 140  ;;  %s2787_s21 = smov (!%p1509_p10), 0  }
 0x3e4   : > { %s2789_s22 = smov (!%p1509_p10), 0  }
 0x3ea LB: >> { %v1323_v16 = vld [vmem:[%s2222_s26] sm:$0xff]  ;;  %v1325_v17 = vld [vmem:[%s2222_s26 + $0x8] sm:$0xff]  ;;  %v1327_v18 = vld [vmem:[%s2222_s26 + $0x10] sm:$0xff]  ;;  %s1349_s23 = sadd.s32 1, %s2226_s21  ;;  %s1317_s22 = sadd.s32 1, %s2230_s22   ;;  %s2230_s22 = sphi %s2789_s22, %s1317_s22   ;;  %s2226_s21 = sphi %s2787_s21, %s2867_s21   ;;  %s2222_s26 = sphi %s2866_s26, %s1354_s26   ;;  %s2218_s12 = sphi %s2865_s12, %s1355_s12  }
 0x3eb   : >> { %1324 = vst [vmem:[%s2218_s12] sm:$0xff] %v1323_v16  ;;  %1326 = vst [vmem:[%s2218_s12 + $0x8] sm:$0xff] %v1325_v17  ;;  %v1329_v19 = vld [vmem:[%s2222_s26 + $0x18] sm:$0xff]  ;;  %v1331_v20 = vld [vmem:[%s2222_s26 + $0x20] sm:$0xff]  ;;  %p1350_p11 = scmp.ge.s32.totalorder %s1349_s23, %s2778_s17  ;;  %p1316_p12 = scmp.ge.s32.totalorder %s1317_s22, %s2778_s17 }
 0x3ec   : >> { %1328 = vst [vmem:[%s2218_s12 + $0x10] sm:$0xff] %v1327_v18  ;;  %v1333_v21 = vld [vmem:[%s2222_s26 + $0x28] sm:$0xff]  ;;  %1330 = vst [vmem:[%s2218_s12 + $0x18] sm:$0xff] %v1329_v19  ;;  %v1335_v22 = vld [vmem:[%s2222_s26 + $0x30] sm:$0xff] }
 0x3ed   : >> { %1332 = vst [vmem:[%s2218_s12 + $0x20] sm:$0xff] %v1331_v20  ;;  %1334 = vst [vmem:[%s2218_s12 + $0x28] sm:$0xff] %v1333_v21  ;;  %v1337_v23 = vld [vmem:[%s2222_s26 + $0x38] sm:$0xff]  ;;  %v1339_v24 = vld [vmem:[%s2222_s26 + $0x40] sm:$0xff]  ;;  %s2874_s23 = smov (%p1350_p11, %s1349_s23), 0  ;;  %1319 = sbr.rel (!%p1316_p12) target bundleno = 1002 (0x3ea), region = 146 }
 0x3ee   : >> { %1336 = vst [vmem:[%s2218_s12 + $0x30] sm:$0xff] %v1335_v22  ;;  %1338 = vst [vmem:[%s2218_s12 + $0x38] sm:$0xff] %v1337_v23  ;;  %v1341_v25 = vld [vmem:[%s2222_s26 + $0x48] sm:$0xff]  ;;  %v1343_v26 = vld [vmem:[%s2222_s26 + $0x50] sm:$0xff]  ;;  %s1352_s24 = smul.u32 104, %s2874_s23  ;;  %s2867_s21 = smov %s2874_s23 }
 0x3ef   : >> { %1340 = vst [vmem:[%s2218_s12 + $0x40] sm:$0xff] %v1339_v24  ;;  %v1345_v27 = vld [vmem:[%s2222_s26 + $0x58] sm:$0xff]  ;;  %1342 = vst [vmem:[%s2218_s12 + $0x48] sm:$0xff] %v1341_v25  ;;  %v1347_v28 = vld [vmem:[%s2222_s26 + $0x60] sm:$0xff] }
 0x3f0   : >> { %1344 = vst [vmem:[%s2218_s12 + $0x50] sm:$0xff] %v1343_v26  ;;  %1346 = vst [vmem:[%s2218_s12 + $0x58] sm:$0xff] %v1345_v27  ;;  %s1354_s26 = scalar_lea.vmem %s2737_s11, %s1352_s24 [#allocation2]  }
 0x3f1   : >> { %1348 = vst [vmem:[%s2218_s12 + $0x60] sm:$0xff] %v1347_v28  ;;  %s1355_s12 = scalar_lea.vmem %s2772_s19, %s1352_s24  }
 0x3f4 PF: > { %2158 = sdivrem.u32 %s2872_s30, 13 }
 0x3f5   : > { %s1510_s25 = smul.u32 104, %s2778_s17 }
 0x3f7   : > { %s1360_s27 = scalar_lea.vmem %s2737_s11, %s1510_s25 [#allocation2]   ;;  %s1362_s28 = scalar_lea.vmem %s2772_s19, %s1510_s25  }
 0x3fd   : > { %s2159_s29 = spop.drf %2158 }
 0x3fe   : > { %p1512_p13 = scmp.le.s32.totalorder %s2159_s29, 0 }
 0x3ff   : > { %s2232_s14 = smov (!%p1512_p13), %s1362_s28   ;;  %s2236_s15 = smov (!%p1512_p13), %s1360_s27  }
 0x400   : > { %1453 = sbr.rel (%p1512_p13) target bundleno = 1041 (0x411), region = 151  ;;  %s2240_s18 = smov (!%p1512_p13), 0  }
 0x401   : > { %s2244_s20 = smov (!%p1512_p13), 0  }
 0x407 LB: >> { %v1372_v29 = vld [vmem:[%s2238_s15] sm:$0xff]  ;;  %s1374_s12 = sadd.s32 1, %s2242_s18  ;;  %s1366_s20 = sadd.s32 1, %s2246_s20   ;;  %s2246_s20 = sphi %s2244_s20, %s1366_s20   ;;  %s2242_s18 = sphi %s2240_s18, %s2241_s18   ;;  %s2238_s15 = sphi %s2236_s15, %s1379_s15   ;;  %s2234_s14 = sphi %s2232_s14, %s1380_s14  }
 0x408   : >> { %1373 = vst [vmem:[%s2234_s14] sm:$0xff] %v1372_v29  ;;  %p1375_p0 = scmp.ge.s32.totalorder %s1374_s12, %s2159_s29  ;;  %p1365_p1 = scmp.ge.s32.totalorder %s1366_s20, %s2159_s29 }
 0x40a   : >> { %s2876_s12 = smov (%p1375_p0, %s1374_s12), 0  ;;  %1368 = sbr.rel (!%p1365_p1) target bundleno = 1031 (0x407), region = 157 }
 0x40b   : >> { %s1513_s11 = sshll.u32 %s2876_s12, 3  ;;  %s2241_s18 = smov %s2876_s12  }
 0x40c   : >> { %s1379_s15 = scalar_lea.vmem %s1360_s27, %s1513_s11 [#allocation2]   ;;  %s1380_s14 = scalar_lea.vmem %s1362_s28, %s1513_s11  }
 0x411 PF: > { %p16_p2 = scmp.ge.s32.totalorder %s2316_s13, 6   ;;  %s2868_s30 = smov %s2210_s10 }
 0x412   : > { %s2869_s10 = smov %s2324_s16  ;;  %s2870_s11 = smov %s2316_s13 }
 0x413   :  { %18 = sbr.rel (!%p16_p2) target bundleno = 2 (0x2), region = 168 }

</bundles_post_ra>
